<compile_context>
chip_gen: v6e
topology: v6e:2x2x1
jax: 0.10.0
libtpu: 0.0.40
codegen_flags: <defaults>
</compile_context>

<pallas_src>
import functools

import jax
import jax.numpy as jnp
from jax.experimental import pallas as pl
from jax.experimental.pallas import tpu as pltpu

BN_EPS = 1e-5


def _fcn_head_kernel(x_ref, w1_ref, b1_ref, w2_ref, b2_ref, o_ref):
    # x_ref:  (1, C1, T)   tile of pixels: channels on sublanes, pixels on lanes
    # w1_ref: (C2p, C1)    BN-folded 1x1 conv weight (resident)
    # b1_ref: (C2p, 1)     BN-folded bias
    # w2_ref: (NC, C2p)    classifier 1x1 weight (resident)
    # b2_ref: (NC, 1)      classifier bias
    # o_ref:  (1, NC, T)
    x = x_ref[0]                                                       # (C1, T)

    # ConvModule: 1x1 conv (BN folded) + ReLU
    h = jnp.dot(w1_ref[...], x, preferred_element_type=jnp.float32)    # (C2p, T)
    h = jnp.maximum(h + b1_ref[...], 0.0)

    # classifier 1x1 conv with bias
    out = jnp.dot(w2_ref[...], h, preferred_element_type=jnp.float32)  # (NC, T)
    out = out + b2_ref[...]

    o_ref[0] = out.astype(o_ref.dtype)


def _round_up(x, m):
    return ((x + m - 1) // m) * m


def _pick_spatial_tile(hw, target):
    """Largest multiple of 128 <= target that divides the (128-aligned) HW."""
    hw_pad = _round_up(hw, 128)
    t = min(_round_up(target, 128), hw_pad)
    while hw_pad % t:
        t -= 128
    return t, hw_pad


@functools.partial(jax.jit, static_argnames=("t_hw_target",))
def fcn_head_forward(x_nchw, params, t_hw_target=2048):
    """x_nchw: (N, C1, H, W) float32 -> (N, num_classes, H, W) float32."""
    w1 = params["w1"]          # (C2, C1)   conv weight (PyTorch layout, squeezed)
    w2 = params["w2"]          # (NC, C2)
    b2 = params["b2"]          # (NC,)
    gamma, beta = params["gamma"], params["beta"]       # (C2,)
    mean, var = params["mean"], params["var"]           # (C2,)

    N, C1, H, W = x_nchw.shape
    C2 = w1.shape[0]
    NC = w2.shape[0]
    HW = H * W

    # --- fold BatchNorm (eval mode) into conv1 (f32 math) ---
    scale = gamma.astype(jnp.float32) * jax.lax.rsqrt(
        var.astype(jnp.float32) + BN_EPS)                # (C2,)
    w1f = w1.astype(jnp.float32) * scale[:, None]        # (C2, C1)
    b1f = beta.astype(jnp.float32) - mean.astype(jnp.float32) * scale

    # --- pad hidden channel dim to a multiple of 128 for full MXU tiles ---
    C2p = _round_up(C2, 128)
    if C2p != C2:
        w1f = jnp.pad(w1f, ((0, C2p - C2), (0, 0)))
        b1f = jnp.pad(b1f, (0, C2p - C2))                # relu(0)=0 -> no effect
        w2p = jnp.pad(w2, ((0, 0), (0, C2p - C2)))       # zero columns -> no effect
    else:
        w2p = w2
    b1f = b1f.reshape(C2p, 1)
    b2p = b2.reshape(NC, 1)

    # --- spatial tiling (lanes) ---
    t_hw, HW_pad = _pick_spatial_tile(HW, t_hw_target)
    x3d = x_nchw.reshape(N, C1, HW)                      # free view, no transpose
    if HW_pad != HW:                                     # rare: HW not 128-aligned
        x3d = jnp.pad(x3d, ((0, 0), (0, 0), (0, HW_pad - HW)))

    grid = (N, HW_pad // t_hw)

    flops = 2 * N * HW_pad * (C1 * C2p + C2p * NC)
    bytes_accessed = 4 * (N * C1 * HW_pad + N * NC * HW_pad
                          + w1f.size + w2p.size + b1f.size + b2p.size)

    out3d = pl.pallas_call(
        _fcn_head_kernel,
        out_shape=jax.ShapeDtypeStruct((N, NC, HW_pad), x_nchw.dtype),
        grid_spec=pltpu.PrefetchScalarGridSpec(
            num_scalar_prefetch=0,
            grid=grid,
            in_specs=[
                pl.BlockSpec((1, C1, t_hw), lambda n, s: (n, 0, s)),  # x tile
                pl.BlockSpec((C2p, C1), lambda n, s: (0, 0)),         # w1 folded
                pl.BlockSpec((C2p, 1), lambda n, s: (0, 0)),          # b1 folded
                pl.BlockSpec((NC, C2p), lambda n, s: (0, 0)),         # w2
                pl.BlockSpec((NC, 1), lambda n, s: (0, 0)),           # b2
            ],
            out_specs=pl.BlockSpec((1, NC, t_hw), lambda n, s: (n, 0, s)),
        ),
        compiler_params=pltpu.CompilerParams(
            dimension_semantics=("parallel", "parallel"),
            vmem_limit_bytes=64 * 1024 * 1024),
        cost_estimate=pl.CostEstimate(
            flops=flops, transcendentals=0, bytes_accessed=bytes_accessed),
    )(x3d, w1f, b1f, w2p, b2p)

    if HW_pad != HW:
        out3d = out3d[:, :, :HW]
    return out3d.reshape(N, NC, H, W)                    # still NCHW, no transpose


def make_params(key, c1, c2, num_classes):
    k1, k2, k3 = jax.random.split(key, 3)
    # Deterministic synthetic init (kaiming-ish scaling for conv weights).
    w1 = jax.random.normal(k1, (c2, c1), jnp.float32) * (2.0 / c1) ** 0.5
    w2 = jax.random.normal(k2, (num_classes, c2), jnp.float32) * (2.0 / c2) ** 0.5
    b2 = jax.random.normal(k3, (num_classes,), jnp.float32) * 0.01
    # BatchNorm default init: gamma=1, beta=0, running_mean=0, running_var=1.
    gamma = jnp.ones((c2,), jnp.float32)
    beta = jnp.zeros((c2,), jnp.float32)
    mean = jnp.zeros((c2,), jnp.float32)
    var = jnp.ones((c2,), jnp.float32)
    return dict(w1=w1, gamma=gamma, beta=beta, mean=mean, var=var, w2=w2, b2=b2)


def reference_forward(x_nchw, params):
    """Pure-JAX reference (un-folded BN, plain einsum) for a sanity check."""
    h = jnp.einsum("nchw,dc->ndhw", x_nchw, params["w1"])
    inv_std = jax.lax.rsqrt(params["var"] + BN_EPS)
    h = ((h - params["mean"][None, :, None, None])
         * (inv_std * params["gamma"])[None, :, None, None]
         + params["beta"][None, :, None, None])
    h = jnp.maximum(h, 0.0)
    o = jnp.einsum("ndhw,kd->nkhw", h, params["w2"]) \
        + params["b2"][None, :, None, None]
    return o


if __name__ == "__main__":
    key = jax.random.PRNGKey(0)
    kx, kp = jax.random.split(key)

    # Small shapes consistent with FCNHead(c1, c2, num_classes=19).
    N, C1, H, W = 2, 32, 16, 16
    C2, NUM_CLASSES = 16, 19

    x = jax.random.normal(kx, (N, C1, H, W), jnp.float32)
    params = make_params(kp, C1, C2, NUM_CLASSES)

    out = jax.block_until_ready(fcn_head_forward(x, params))

    ref = reference_forward(x, params)
    assert out.shape == (N, NUM_CLASSES, H, W), out.shape
    assert jnp.allclose(out, ref, atol=1e-4, rtol=1e-4), "mismatch vs reference"

    print("KERNEL_OK")
</pallas_src>

<mosaic_0001>
module attributes {stable_mosaic.version = 11 : i64} {
  func.func @_fcn_head_kernel(%arg0: i32, %arg1: i32, %arg2: memref<1x32x256xf32, #tpu.memory_space<vmem>>, %arg3: memref<128x32xf32, #tpu.memory_space<vmem>>, %arg4: memref<128x1xf32, #tpu.memory_space<vmem>>, %arg5: memref<19x128xf32, #tpu.memory_space<vmem>>, %arg6: memref<19x1xf32, #tpu.memory_space<vmem>>, %arg7: memref<1x19x256xf32, #tpu.memory_space<vmem>>) attributes {dimension_semantics = [#tpu.dimension_semantics<parallel>, #tpu.dimension_semantics<parallel>], iteration_bounds = array<i64: 2, 1>, scalar_prefetch = 0 : i64, scratch_operands = 0 : i64, tpu.core_type = #tpu.core_type<tc>, window_params = [{transform_indices = @transform_0, window_bounds = array<i64: 1, 32, 256>}, {pipeline_mode = #tpu.pipeline_mode<synchronous>, transform_indices = @transform_1, window_bounds = array<i64: 128, 32>}, {pipeline_mode = #tpu.pipeline_mode<synchronous>, transform_indices = @transform_2, window_bounds = array<i64: 128, 1>}, {pipeline_mode = #tpu.pipeline_mode<synchronous>, transform_indices = @transform_3, window_bounds = array<i64: 19, 128>}, {pipeline_mode = #tpu.pipeline_mode<synchronous>, transform_indices = @transform_4, window_bounds = array<i64: 19, 1>}, {transform_indices = @transform_5, window_bounds = array<i64: 1, 19, 256>}]} {
    %c0 = arith.constant 0 : index
    %c0_0 = arith.constant 0 : index
    %c0_1 = arith.constant 0 : index
    %0 = vector.load %arg2[%c0, %c0_0, %c0_1] : memref<1x32x256xf32, #tpu.memory_space<vmem>>, vector<1x32x256xf32>
    %1 = vector.shape_cast %0 : vector<1x32x256xf32> to vector<32x256xf32>
    %c0_2 = arith.constant 0 : index
    %c0_3 = arith.constant 0 : index
    %2 = vector.load %arg3[%c0_2, %c0_3] : memref<128x32xf32, #tpu.memory_space<vmem>>, vector<128x32xf32>
    %cst = arith.constant dense<0.000000e+00> : vector<128x256xf32>
    %3 = tpu.matmul %2, %1, %cst {dimension_numbers = #tpu.dot_dimension_numbers<[1], [0], [0], [1], [0, 0, 1, 1], [], []>} : vector<128x32xf32>, vector<32x256xf32>, vector<128x256xf32> -> vector<128x256xf32>
    %c0_4 = arith.constant 0 : index
    %c0_5 = arith.constant 0 : index
    %4 = vector.load %arg4[%c0_4, %c0_5] : memref<128x1xf32, #tpu.memory_space<vmem>>, vector<128x1xf32>
    %5 = vector.broadcast %4 : vector<128x1xf32> to vector<128x256xf32>
    %6 = arith.addf %3, %5 : vector<128x256xf32>
    %cst_6 = arith.constant 0.000000e+00 : f32
    %7 = vector.broadcast %cst_6 : f32 to vector<128x256xf32>
    %8 = arith.maximumf %6, %7 : vector<128x256xf32>
    %c0_7 = arith.constant 0 : index
    %c0_8 = arith.constant 0 : index
    %9 = vector.load %arg5[%c0_7, %c0_8] : memref<19x128xf32, #tpu.memory_space<vmem>>, vector<19x128xf32>
    %cst_9 = arith.constant dense<0.000000e+00> : vector<19x256xf32>
    %10 = tpu.matmul %9, %8, %cst_9 {dimension_numbers = #tpu.dot_dimension_numbers<[1], [0], [0], [1], [0, 0, 1, 1], [], []>} : vector<19x128xf32>, vector<128x256xf32>, vector<19x256xf32> -> vector<19x256xf32>
    %c0_10 = arith.constant 0 : index
    %c0_11 = arith.constant 0 : index
    %11 = vector.load %arg6[%c0_10, %c0_11] : memref<19x1xf32, #tpu.memory_space<vmem>>, vector<19x1xf32>
    %12 = vector.broadcast %11 : vector<19x1xf32> to vector<19x256xf32>
    %13 = arith.addf %10, %12 : vector<19x256xf32>
    %c0_12 = arith.constant 0 : index
    %c0_13 = arith.constant 0 : index
    %c0_14 = arith.constant 0 : index
    %14 = vector.load %arg7[%c0_12, %c0_13, %c0_14] : memref<1x19x256xf32, #tpu.memory_space<vmem>>, vector<1x19x256xf32>
    %15 = vector.shape_cast %14 : vector<1x19x256xf32> to vector<19x256xf32>
    %16 = vector.shape_cast %13 : vector<19x256xf32> to vector<1x19x256xf32>
    tpu.vector_store %arg7[%c0_12, %c0_13, %c0_14], %16 {strides = array<i32>} : memref<1x19x256xf32, #tpu.memory_space<vmem>>, vector<1x19x256xf32>,
    return
  }
  func.func @transform_0(%arg0: i32, %arg1: i32) -> (i32, i32, i32) {
    %c0_i32 = arith.constant 0 : i32
    %c0_i32_0 = arith.constant 0 : i32
    return %arg0, %c0_i32, %arg1 : i32, i32, i32
  }
  func.func @transform_1(%arg0: i32, %arg1: i32) -> (i32, i32) {
    %c0_i32 = arith.constant 0 : i32
    %c0_i32_0 = arith.constant 0 : i32
    %c0_i32_1 = arith.constant 0 : i32
    return %c0_i32, %c0_i32_0 : i32, i32
  }
  func.func @transform_2(%arg0: i32, %arg1: i32) -> (i32, i32) {
    %c0_i32 = arith.constant 0 : i32
    %c0_i32_0 = arith.constant 0 : i32
    %c0_i32_1 = arith.constant 0 : i32
    return %c0_i32, %c0_i32_0 : i32, i32
  }
  func.func @transform_3(%arg0: i32, %arg1: i32) -> (i32, i32) {
    %c0_i32 = arith.constant 0 : i32
    %c0_i32_0 = arith.constant 0 : i32
    %c0_i32_1 = arith.constant 0 : i32
    return %c0_i32, %c0_i32_0 : i32, i32
  }
  func.func @transform_4(%arg0: i32, %arg1: i32) -> (i32, i32) {
    %c0_i32 = arith.constant 0 : i32
    %c0_i32_0 = arith.constant 0 : i32
    %c0_i32_1 = arith.constant 0 : i32
    return %c0_i32, %c0_i32_0 : i32, i32
  }
  func.func @transform_5(%arg0: i32, %arg1: i32) -> (i32, i32, i32) {
    %c0_i32 = arith.constant 0 : i32
    %c0_i32_0 = arith.constant 0 : i32
    return %arg0, %c0_i32, %arg1 : i32, i32, i32
  }
}

</mosaic_0001>

<bundles_post_ra>
// kernel: fcn_head_forward.1
= control target key start
LH: loop header
LB: loop body
LE: loop exit
PB: predicated region body
PF: predicated region fallthrough
CT: control target
= control target key end

     0   :  { %s935_s18 = smov 0   ;;  %s937_s19 = smov 0   ;;  %s1169_s0 = inlined_call_operand.vmem [shape: f32[2,32,256], index: 0, kind: input, shape index: {}]   ;;  %s1170_s1 = inlined_call_operand.vmem [shape: f32[128,32], index: 1, kind: input, shape index: {}]   ;;  %s1171_s2 = inlined_call_operand.vmem [shape: f32[128,1], index: 2, kind: input, shape index: {}]   ;;  %s1172_s3 = inlined_call_operand.vmem [shape: f32[19,128], index: 3, kind: input, shape index: {}]   ;;  %s1173_s4 = inlined_call_operand.vmem [shape: f32[19,1], index: 4, kind: input, shape index: {}]   ;;  %s1174_s5 = inlined_call_operand.vmem [shape: f32[2,19,256], index: 5, kind: output, shape index: {}]  }
   0x1   :  { %s939_s20 = smov 0  }
   0x2 LB: > { %s27_s21 = sadd.s32 1, %s897_s19  ;;  %p827_p0 = scmp.ge.s32.totalorder %s901_s20, 1  ;;  %s901_s20 = sphi %s939_s20, %s15_s20   ;;  %s897_s19 = sphi %s937_s19, %s1176_s19   ;;  %s893_s18 = sphi %s935_s18, %s1175_s18  }
   0x3   : > { %p29_p1 = scmp.ge.s32.totalorder %s27_s21, 2  ;;  %p208_p2 = scmp.lt.s32.totalorder %s901_s20, 3 }
   0x5   : > { %s1178_s21 = smov (%p29_p1, %s27_s21), 0  ;;  %p209_p3 = pnand %p827_p0, %p208_p2 }
   0x6   : > { %p245_p4 = scmp.lt.s32.totalorder (!%p209_p3), %s893_s18, 1 }
   0x7   : > { %212 = sbr.rel (%p209_p3) target bundleno = 522 (0x20a), region = 40 }
   0xc   : > { %v903_v0 = vmov 0.0   ;;  %s1180_s18 = smov (!%p245_p4, %s893_s18), 1  ;;  %v904_v1 = vmov 0   ;;  %v301_v2 = vld [vmem:[%s1171_s2 + $0x68] sm:$0xff]  ;;  %v303_v3 = vld [vmem:[%s1171_s2 + $0x78] sm:$0xff]  ;;  %v300_v4 = vld [vmem:[%s1171_s2 + $0x60] sm:$0xff] }
   0xd   : > { %497 = vmatprep.mubr.f32.mxu0 %v903_v0  ;;  %711 = vmatprep.mubr.f32.mxu1 %v903_v0  ;;  %s849_s24 = sshll.u32 %s1180_s18, 6  ;;  %v302_v5 = vld [vmem:[%s1171_s2 + $0x70] sm:$0xff]  ;;  %v299_v14 = vld [vmem:[%s1171_s2 + $0x58] sm:$0xff]  ;;  %v272_v16 = vld [vmem:[%s1170_s1] sm:$0xff]  ;;  %vm384_vm0 = vcmask 261120   ;;  %s850_s14 = smul.u32 48, %s1180_s18 }
   0xe   : > { %878 = vset.pattern.permute.xlu1 %v904_v1  ;;  %877 = vset.pattern.permute.xlu0 %v904_v1  ;;  %s252_s29 = scalar_lea.vmem %s1169_s0, %s849_s24  ;;  %v298_v12 = vld [vmem:[%s1171_s2 + $0x50] sm:$0xff]  ;;  %v296_v17 = vld [vmem:[%s1171_s2 + $0x40] sm:$0xff]  ;;  %v297_v18 = vld [vmem:[%s1171_s2 + $0x48] sm:$0xff] }
   0xf   : > { %371 = vperm.xlu1 %878, %v301_v2   ;;  %381 = vperm.xlu0 %877, %v303_v3   ;;  %v271_v6 = vld [vmem:[%s252_s29 + $0x38] sm:$0xff]  ;;  %v270_v7 = vld [vmem:[%s252_s29 + $0x30] sm:$0xff]  ;;  %v269_v8 = vld [vmem:[%s252_s29 + $0x28] sm:$0xff]  ;;  %s262_s17 = scalar_lea.vmem %s1174_s5, %s850_s14 }
  0x10   : > { %457 = vmatprep.subr.mxu0 %v271_v6  ;;  %v268_v9 = vld [vmem:[%s252_s29 + $0x20] sm:$0xff]  ;;  %v267_v10 = vld [vmem:[%s252_s29 + $0x18] sm:$0xff]  ;;  %v266_v11 = vld [vmem:[%s252_s29 + $0x10] sm:$0xff] }
  0x11   : > { %458 = vmatpush1.msra.mxu0 %v270_v7  ;;  %v265_v13 = vld [vmem:[%s252_s29 + $0x8] sm:$0xff]  ;;  %v264_v15 = vld [vmem:[%s252_s29] sm:$0xff]  ;;  %v294_v20 = vld [vmem:[%s1171_s2 + $0x30] sm:$0xff] }
  0x12   : > { %459 = vmatprep.subr.mxu0 %v269_v8  ;;  %v273_v19 = vld [vmem:[%s1170_s1 + $0x8] sm:$0xff]  ;;  %v295_v21 = vld [vmem:[%s1171_s2 + $0x38] sm:$0xff]  ;;  %v274_v22 = vld [vmem:[%s1170_s1 + $0x10] sm:$0xff] }
  0x13   : > { %366 = vperm.xlu1 %878, %v300_v4   ;;  %376 = vperm.xlu0 %877, %v302_v5   ;;  %v292_v23 = vld [vmem:[%s1171_s2 + $0x20] sm:$0xff]  ;;  %v293_v24 = vld [vmem:[%s1171_s2 + $0x28] sm:$0xff]  ;;  %v275_v25 = vld [vmem:[%s1170_s1 + $0x18] sm:$0xff] }
  0x14   : > { %460 = vmatpush1.msra.mxu0 %v268_v9  ;;  %v290_v26 = vld [vmem:[%s1171_s2 + $0x10] sm:$0xff]  ;;  %v291_v27 = vld [vmem:[%s1171_s2 + $0x18] sm:$0xff]  ;;  %v276_v28 = vld [vmem:[%s1170_s1 + $0x20] sm:$0xff] }
  0x15   : > { %461 = vmatprep.subr.mxu0 %v267_v10  ;;  %v288_v29 = vld [vmem:[%s1171_s2] sm:$0xff]  ;;  %v289_v30 = vld [vmem:[%s1171_s2 + $0x8] sm:$0xff]  ;;  %v278_v34 = vld [vmem:[%s1170_s1 + $0x30] sm:$0xff] }
  0x16   : > { %462 = vmatpush1.msra.mxu0 %v266_v11  ;;  %v277_v31 = vld [vmem:[%s1170_s1 + $0x28] sm:$0xff]  ;;  %v629_v33 = vld [vmem:[%s1173_s4] sm:$0xff]  ;;  %v631_v35 = vld [vmem:[%s1173_s4 + $0x10] sm:$0x7] }
  0x17   : > { %356 = vperm.xlu1 %878, %v298_v12   ;;  %463 = vmatprep.subr.mxu0 %v265_v13  ;;  %v630_v32 = vld [vmem:[%s1173_s4 + $0x8] sm:$0xff]  ;;  %v279_v36 = vld [vmem:[%s1170_s1 + $0x38] sm:$0xff]  ;;  %v280_v37 = vld [vmem:[%s1170_s1 + $0x40] sm:$0xff] }
  0x18   : > { %361 = vperm.xlu0 %877, %v299_v14   ;;  %464 = vmatpush1.msra.mxu0 %v264_v15  ;;  %v281_v38 = vld [vmem:[%s1170_s1 + $0x48] sm:$0xff]  ;;  %v282_v39 = vld [vmem:[%s1170_s1 + $0x50] sm:$0xff]  ;;  %v283_v40 = vld [vmem:[%s1170_s1 + $0x58] sm:$0xff] }
  0x19   : > { %831 = vmatmul.mubr.msk.f32.vlgmr.msra.gmra.mxu0 %vm384_vm0, %v272_v16  ;;  %v284_v41 = vld [vmem:[%s1170_s1 + $0x60] sm:$0xff]  ;;  %v285_v42 = vld [vmem:[%s1170_s1 + $0x68] sm:$0xff]  ;;  %v286_v43 = vld [vmem:[%s1170_s1 + $0x70] sm:$0xff] }
  0x1a   : > { %503 = vmatprep.mubr.f32.mxu0 %v903_v0  ;;  %v287_v44 = vld [vmem:[%s1170_s1 + $0x78] sm:$0xff] }
  0x1b   : > { %346 = vperm.xlu1 %878, %v296_v17  }
  0x1c   : > { %351 = vperm.xlu0 %877, %v297_v18  }
  0x1d   : > { %832 = vmatmul.mubr.msk.f32.gmra.mxu0 %vm384_vm0, %v273_v19 }
  0x1e   : > { %509 = vmatprep.mubr.f32.mxu0 %v903_v0 }
  0x1f   : > { %336 = vperm.xlu1 %878, %v294_v20  }
  0x20   : > { %341 = vperm.xlu0 %877, %v295_v21  }
  0x21   : > { %833 = vmatmul.mubr.msk.f32.gmra.mxu0 %vm384_vm0, %v274_v22 }
  0x22   : > { %515 = vmatprep.mubr.f32.mxu0 %v903_v0 }
  0x23   : > { %326 = vperm.xlu1 %878, %v292_v23  }
  0x24   : > { %331 = vperm.xlu0 %877, %v293_v24  }
  0x25   : > { %834 = vmatmul.mubr.msk.f32.gmra.mxu0 %vm384_vm0, %v275_v25 }
  0x26   : > { %521 = vmatprep.mubr.f32.mxu0 %v903_v0 }
  0x27   : > { %316 = vperm.xlu1 %878, %v290_v26  }
  0x28   : > { %321 = vperm.xlu0 %877, %v291_v27  }
  0x29   : > { %835 = vmatmul.mubr.msk.f32.gmra.mxu0 %vm384_vm0, %v276_v28 }
  0x2a   : > { %527 = vmatprep.mubr.f32.mxu0 %v903_v0 }
  0x2b   : > { %306 = vperm.xlu1 %878, %v288_v29  }
  0x2c   : > { %311 = vperm.xlu0 %877, %v289_v30  }
  0x2d   : > { %836 = vmatmul.mubr.msk.f32.gmra.mxu0 %vm384_vm0, %v277_v31 }
  0x2e   : > { %533 = vmatprep.mubr.f32.mxu0 %v903_v0 }
  0x2f   : > { %639 = vperm.xlu1 %878, %v630_v32  }
  0x30   : > { %634 = vperm.xlu0 %877, %v629_v33  }
  0x31   : > { %837 = vmatmul.mubr.msk.f32.gmra.mxu0 %vm384_vm0, %v278_v34 }
  0x32   : > { %539 = vmatprep.mubr.f32.mxu0 %v903_v0 }
  0x34   : > { %644 = vperm.xlu0 %877, %v631_v35  }
  0x35   : > { %838 = vmatmul.mubr.msk.f32.gmra.mxu0 %vm384_vm0, %v279_v36 }
  0x36   : > { %545 = vmatprep.mubr.f32.mxu0 %v903_v0 }
  0x39   : > { %839 = vmatmul.mubr.msk.f32.gmra.mxu0 %vm384_vm0, %v280_v37 }
  0x3a   : > { %551 = vmatprep.mubr.f32.mxu0 %v903_v0 }
  0x3d   : > { %840 = vmatmul.mubr.msk.f32.gmra.mxu0 %vm384_vm0, %v281_v38 }
  0x3e   : > { %557 = vmatprep.mubr.f32.mxu0 %v903_v0 }
  0x41   : > { %841 = vmatmul.mubr.msk.f32.gmra.mxu0 %vm384_vm0, %v282_v39 }
  0x42   : > { %563 = vmatprep.mubr.f32.mxu0 %v903_v0 }
  0x45   : > { %842 = vmatmul.mubr.msk.f32.gmra.mxu0 %vm384_vm0, %v283_v40 }
  0x46   : > { %569 = vmatprep.mubr.f32.mxu0 %v903_v0 }
  0x49   : > { %843 = vmatmul.mubr.msk.f32.gmra.mxu0 %vm384_vm0, %v284_v41 }
  0x4a   : > { %575 = vmatprep.mubr.f32.mxu0 %v903_v0 }
  0x4d   : > { %844 = vmatmul.mubr.msk.f32.gmra.mxu0 %vm384_vm0, %v285_v42 }
  0x4e   : > { %581 = vmatprep.mubr.f32.mxu0 %v903_v0 }
  0x51   : > { %845 = vmatmul.mubr.msk.f32.gmra.mxu0 %vm384_vm0, %v286_v43 }
  0x52   : > { %587 = vmatprep.mubr.f32.mxu0 %v903_v0 }
  0x55   : > { %846 = vmatmul.mubr.msk.f32.gmra.mxu0 %vm384_vm0, %v287_v44 }
  0x8a   : > { %v382_v5 = vpop.permute.xlu0 %381  ;;  %v372_v7 = vpop.permute.xlu1 %371 }
  0x8e   : > { %v377_v10 = vpop.permute.xlu0 %376  ;;  %v367_v12 = vpop.permute.xlu1 %366 }
  0x92   : > { %v357_v17 = vpop.permute.xlu1 %356 }
  0x93   : > { %v362_v15 = vpop.permute.xlu0 %361 }
  0x96   : > { %v347_v25 = vpop.permute.xlu1 %346 }
  0x97   : > { %v352_v21 = vpop.permute.xlu0 %351 }
  0x9a   : > { %v337_v39 = vpop.permute.xlu1 %336 }
  0x9b   : > { %v342_v34 = vpop.permute.xlu0 %341 }
  0xd9   : > { %v1097_v45 = vpop.f32.mrf.mxu0 }
  0xdb   : > { %v1099_v46 = vpop.f32.mrf.mxu0 }
  0xdd   : > { %v1101_v47 = vpop.f32.mrf.mxu0 }
  0xdf   : > { %v1103_v48 = vpop.f32.mrf.mxu0 }
  0xe1   : > { %v1105_v49 = vpop.f32.mrf.mxu0 }
  0xe3   : > { %v1107_v50 = vpop.f32.mrf.mxu0 }
  0xe5   : > { %v1109_v51 = vpop.f32.mrf.mxu0 }
  0xe7   : > { %v1111_v52 = vpop.f32.mrf.mxu0 }
  0xe9   : > { %v1113_v53 = vpop.f32.mrf.mxu0 }
  0xeb   : > { %v1115_v54 = vpop.f32.mrf.mxu0 }
  0xed   : > { %v1117_v55 = vpop.f32.mrf.mxu0 }
  0xef   : > { %v1119_v56 = vpop.f32.mrf.mxu0 }
  0xf1   : > { %v1121_v57 = vpop.f32.mrf.mxu0 }
  0xf3   : > { %v1123_v58 = vpop.f32.mrf.mxu0 }
  0xf5   : > { %v1125_v59 = vpop.f32.mrf.mxu0 }
  0xf7   : > { %v1127_v60 = vpop.f32.mrf.mxu0 }
  0xf9   : > { %v547_v61 = vpop.f32.mrf.mxu0 }
  0xfb   : > { %v549_v62 = vpop.f32.mrf.mxu0 }
  0xfd   : > { %v553_v63 = vpop.f32.mrf.mxu0 }
  0xff   : > { %v555_v1 = vpop.f32.mrf.mxu0 }
 0x100   : > { %v556_v44 = vadd.f32 %v555_v1, %v352_v21 }
 0x101   : > { %v559_v2 = vpop.f32.mrf.mxu0 }
 0x102   : > { %v560_v42 = vadd.f32 %v559_v2, %v357_v17  ;;  %v542_v2 = vadd.f32 %v1125_v59, %v342_v34 }
 0x103   : > { %v561_v3 = vpop.f32.mrf.mxu0 }
 0x104   : > { %v562_v40 = vadd.f32 %v561_v3, %v357_v17  ;;  %v544_v3 = vadd.f32 %v1127_v60, %v342_v34 }
 0x105   : > { %v565_v4 = vpop.f32.mrf.mxu0 }
 0x106   : > { %v566_v37 = vadd.f32 %v565_v4, %v362_v15  ;;  %v548_v4 = vadd.f32 %v547_v61, %v347_v25  ;;  %v609_v17 = vmax.f32 %v544_v3, 0.0 }
 0x107   : > { %v567_v6 = vpop.f32.mrf.mxu0 }
 0x108   : > { %v568_v35 = vadd.f32 %v567_v6, %v362_v15  ;;  %v550_v6 = vadd.f32 %v549_v62, %v347_v25  ;;  %v536_v62 = vadd.f32 %v1121_v57, %v337_v39  ;;  %v610_v15 = vmax.f32 %v548_v4, 0.0 }
 0x109   : > { %v571_v8 = vpop.f32.mrf.mxu0 }
 0x10a   : > { %v572_v32 = vadd.f32 %v571_v8, %v367_v12  ;;  %v616_v8 = vmax.f32 %v566_v37, 0.0 }
 0x10b   : > { %v573_v9 = vpop.f32.mrf.mxu0 }
 0x10c   : > { %v574_v30 = vadd.f32 %v573_v9, %v367_v12  ;;  %v618_v43 = vmax.f32 %v572_v32, 0.0  ;;  %v332_v9 = vpop.permute.xlu0 %331  ;;  %v327_v12 = vpop.permute.xlu1 %326 }
 0x10d   : > { %v577_v11 = vpop.f32.mrf.mxu0  ;;  %v530_v60 = vadd.f32 %v1117_v55, %v332_v9 }
 0x10e   : > { %v578_v28 = vadd.f32 %v577_v11, %v372_v7  ;;  %v619_v41 = vmax.f32 %v574_v30, 0.0  ;;  %v614_v11 = vmax.f32 %v560_v42, 0.0 }
 0x10f   : > { %v579_v13 = vpop.f32.mrf.mxu0 }
 0x110   : > { %v580_v26 = vadd.f32 %v579_v13, %v372_v7  ;;  %v620_v38 = vmax.f32 %v578_v28, 0.0  ;;  %v554_v7 = vadd.f32 %v553_v63, %v352_v21  ;;  %v613_v13 = vmax.f32 %v556_v44, 0.0  ;;  %v322_v61 = vpop.permute.xlu0 %321  ;;  %v317_v59 = vpop.permute.xlu1 %316 }
 0x111   : > { %v583_v14 = vpop.f32.mrf.mxu0  ;;  %v538_v63 = vadd.f32 %v1123_v58, %v337_v39  ;;  %v524_v58 = vadd.f32 %v1113_v53, %v327_v12  ;;  %v606_v21 = vmax.f32 %v536_v62, 0.0  ;;  %v520_v57 = vadd.f32 %v1111_v52, %v322_v61 }
 0x112   : > { %v584_v24 = vadd.f32 %v583_v14, %v377_v10  ;;  %v621_v36 = vmax.f32 %v580_v26, 0.0  ;;  %v612_v1 = vmax.f32 %v554_v7, 0.0  ;;  %v611_v14 = vmax.f32 %v550_v6, 0.0 }
 0x113   : > { %v585_v16 = vpop.f32.mrf.mxu0  ;;  %v602_v26 = vmax.f32 %v524_v58, 0.0  ;;  %v601_v28 = vmax.f32 %v520_v57, 0.0 }
 0x114   : > { %v586_v22 = vadd.f32 %v585_v16, %v377_v10  ;;  %v622_v33 = vmax.f32 %v584_v24, 0.0  ;;  %v615_v10 = vmax.f32 %v562_v40, 0.0  ;;  %v532_v16 = vadd.f32 %v1119_v56, %v332_v9  ;;  %v312_v55 = vpop.permute.xlu0 %311  ;;  %v307_v53 = vpop.permute.xlu1 %306 }
 0x115   : > { %v589_v18 = vpop.f32.mrf.mxu0  ;;  %v518_v56 = vadd.f32 %v1109_v51, %v322_v61  ;;  %v514_v24 = vadd.f32 %v1107_v50, %v317_v59  ;;  %v506_v52 = vadd.f32 %v1101_v47, %v312_v55  ;;  %v502_v51 = vadd.f32 %v1099_v46, %v307_v53  ;;  %v626_v47 = vld [vmem:[%s1172_s3] sm:$0xff]  ;;  %v628_v46 = vld [vmem:[%s1172_s3 + $0x10] sm:$0x7] }
 0x116   : > { %v590_v19 = vadd.f32 %v589_v18, %v382_v5  ;;  %v623_v31 = vmax.f32 %v586_v22, 0.0  ;;  %v608_v18 = vmax.f32 %v542_v2, 0.0  ;;  %v605_v22 = vmax.f32 %v532_v16, 0.0 }
 0x117   : > { %v591_v20 = vpop.f32.mrf.mxu0  ;;  %v599_v30 = vmax.f32 %v514_v24, 0.0  ;;  %v500_v50 = vadd.f32 %v1097_v45, %v307_v53  ;;  %v596_v32 = vmax.f32 %v506_v52, 0.0  ;;  %v627_v45 = vld [vmem:[%s1172_s3 + $0x8] sm:$0xff] }
 0x118   : > { %v592_v23 = vadd.f32 %v591_v20, %v382_v5  ;;  %v624_v29 = vmax.f32 %v590_v19, 0.0  ;;  %v617_v5 = vmax.f32 %v568_v35, 0.0  ;;  %v526_v19 = vadd.f32 %v1115_v54, %v327_v12  ;;  %v635_v34 = vpop.permute.xlu0 %634  ;;  %v640_v39 = vpop.permute.xlu1 %639 }
 0x119   : > { %v607_v20 = vmax.f32 %v538_v63, 0.0  ;;  %v512_v54 = vadd.f32 %v1105_v49, %v317_v59 }
 0x11a   : > { %v625_v27 = vmax.f32 %v592_v23, 0.0  ;;  %v604_v23 = vmax.f32 %v530_v60, 0.0  ;;  %v603_v25 = vmax.f32 %v526_v19, 0.0 }
 0x11c   : > { %647 = vmatprep.subr.mxu1 %v625_v27  ;;  %v508_v27 = vadd.f32 %v1103_v48, %v312_v55  ;;  %v595_v48 = vmax.f32 %v502_v51, 0.0 }
 0x11d   : > { %648 = vmatpush1.msra.mxu1 %v624_v29  ;;  %v600_v29 = vmax.f32 %v518_v56, 0.0 }
 0x11e   : > { %649 = vmatprep.subr.mxu1 %v623_v31  ;;  %v598_v31 = vmax.f32 %v512_v54, 0.0  ;;  %v597_v49 = vmax.f32 %v508_v27, 0.0 }
 0x11f   : > { %650 = vmatpush1.msra.mxu1 %v622_v33  ;;  %v594_v33 = vmax.f32 %v500_v50, 0.0 }
 0x120   : > { %651 = vmatprep.subr.mxu1 %v621_v36 }
 0x121   : > { %652 = vmatpush1.msra.mxu1 %v620_v38 }
 0x122   : > { %653 = vmatprep.subr.mxu1 %v619_v41 }
 0x123   : > { %654 = vmatpush1.msra.mxu1 %v618_v43  ;;  %v645_v43 = vpop.permute.xlu0 %644 }
 0x124   : > { %655 = vmatprep.subr.mxu1 %v617_v5 }
 0x125   : > { %656 = vmatpush1.msra.mxu1 %v616_v8 }
 0x126   : > { %657 = vmatprep.subr.mxu1 %v615_v10 }
 0x127   : > { %658 = vmatpush1.msra.mxu1 %v614_v11 }
 0x128   : > { %659 = vmatprep.subr.mxu1 %v613_v13 }
 0x129   : > { %660 = vmatpush1.msra.mxu1 %v612_v1 }
 0x12a   : > { %661 = vmatprep.subr.mxu1 %v611_v14 }
 0x12b   : > { %662 = vmatpush1.msra.mxu1 %v610_v15 }
 0x12c   : > { %663 = vmatprep.subr.mxu1 %v609_v17 }
 0x12d   : > { %664 = vmatpush1.msra.mxu1 %v608_v18 }
 0x12e   : > { %665 = vmatprep.subr.mxu1 %v607_v20 }
 0x12f   : > { %666 = vmatpush1.msra.mxu1 %v606_v21 }
 0x130   : > { %667 = vmatprep.subr.mxu1 %v605_v22 }
 0x131   : > { %668 = vmatpush1.msra.mxu1 %v604_v23 }
 0x132   : > { %669 = vmatprep.subr.mxu1 %v603_v25 }
 0x133   : > { %670 = vmatpush1.msra.mxu1 %v602_v26 }
 0x134   : > { %671 = vmatprep.subr.mxu1 %v601_v28 }
 0x135   : > { %672 = vmatpush1.msra.mxu1 %v600_v29 }
 0x136   : > { %673 = vmatprep.subr.mxu1 %v599_v30 }
 0x137   : > { %674 = vmatpush1.msra.mxu1 %v598_v31 }
 0x138   : > { %675 = vmatprep.subr.mxu1 %v597_v49 }
 0x139   : > { %676 = vmatpush1.msra.mxu1 %v596_v32 }
 0x13a   : > { %677 = vmatprep.subr.mxu1 %v595_v48 }
 0x13b   : > { %678 = vmatpush1.msra.mxu1 %v594_v33 }
 0x13c   : > { %712 = vmatmul.mubr.f32.vlgmr.msra.gmra.mxu1 %v626_v47 }
 0x13d   : > { %717 = vmatprep.mubr.f32.mxu1 %v903_v0 }
 0x140   : > { %718 = vmatmul.mubr.f32.gmra.mxu1 %v627_v45 }
 0x141   : > { %723 = vmatprep.mubr.f32.mxu1 %v903_v0 }
 0x144   : > { %724 = vmatmul.mubr.f32.gmra.mxu1 %v628_v46 }
 0x1fc   : > { %v713_v35 = vpop.f32.mrf.mxu1 }
 0x1fd   : > { %v714_v36 = vadd.f32 %v713_v35, %v635_v34 }
 0x1fe   : > { %v715_v37 = vpop.f32.mrf.mxu1 }
 0x1ff   : > { %730 = vst [vmem:[%s262_s17] sm:$0xff] %v714_v36  ;;  %v716_v38 = vadd.f32 %v715_v37, %v635_v34 }
 0x200   : > { %v719_v40 = vpop.f32.mrf.mxu1 }
 0x201   : > { %731 = vst [vmem:[%s262_s17 + $0x8] sm:$0xff] %v716_v38  ;;  %v720_v0 = vadd.f32 %v719_v40, %v640_v39 }
 0x202   : > { %v721_v41 = vpop.f32.mrf.mxu1 }
 0x203   : > { %732 = vst [vmem:[%s262_s17 + $0x10] sm:$0xff] %v720_v0  ;;  %v722_v42 = vadd.f32 %v721_v41, %v640_v39 }
 0x204   : > { %v725_v44 = vpop.f32.mrf.mxu1 }
 0x205   : > { %733 = vst [vmem:[%s262_s17 + $0x18] sm:$0xff] %v722_v42  ;;  %v726_v5 = vadd.f32 %v725_v44, %v645_v43 }
 0x206   : > { %v727_v7 = vpop.f32.mrf.mxu1 }
 0x207   : > { %734 = vst [vmem:[%s262_s17 + $0x20] sm:$0x7] %v726_v5  ;;  %v728_v8 = vadd.f32 %v727_v7, %v645_v43 }
 0x209   : > { %735 = vst [vmem:[%s262_s17 + $0x28] sm:$0x7] %v728_v8 }
 0x20a PF: > { %s15_s20 = sadd.s32 1, %s901_s20   ;;  %s1175_s18 = smov %s897_s19 }
 0x20b   : > { %p12_p5 = scmp.ge.s32.totalorder %s15_s20, 4   ;;  %s1176_s19 = smov %s1178_s21 }
 0x20d   :  { %14 = sbr.rel (!%p12_p5) target bundleno = 2 (0x2), region = 70 }

</bundles_post_ra>
